<compile_context>
chip_gen: v6e
topology: v6e:2x2x1
jax: 0.10.0
libtpu: 0.0.40
codegen_flags: <defaults>
</compile_context>

<pallas_src>
import jax
import jax.numpy as jnp
from jax import lax
from jax.experimental import pallas as pl
from jax.experimental.pallas import tpu as pltpu


def _round_up(x, m):
    return ((x + m - 1) // m) * m


def _cdiv(a, b):
    return (a + b - 1) // b


# ---------------------------------------------------------------------------
# Kernel 1: batched last-token heads (generated_actor, profit_critic,
# actor-head weight fold).  Single invocation over the whole batch (no grid).
# ---------------------------------------------------------------------------
def head_kernel(z_ref,
                gw1, gb1, gw2, gb2, gw3, gb3,
                cw1, cb1, cw2, cb2, cw3r, cb3,
                hw,
                gh_ref, profit_ref):
    z = z_ref[...]                                                    # (B, Hb) bf16

    # generated_actor MLP, then fold the actor-head weight in once per batch.
    g = jnp.dot(z, gw1[...], preferred_element_type=jnp.float32) + gb1[...]
    g = jnp.maximum(g, 0.0)
    g = jnp.dot(g.astype(jnp.bfloat16), gw2[...],
                preferred_element_type=jnp.float32) + gb2[...]
    g = jnp.maximum(g, 0.0)
    g = jnp.dot(g.astype(jnp.bfloat16), gw3[...],
                preferred_element_type=jnp.float32) + gb3[...]
    gh_ref[...] = g * hw[...]                                         # (B, H) f32

    # profit_critic MLP; final H->1 layer as a VPU multiply + lane reduce.
    c = jnp.dot(z, cw1[...], preferred_element_type=jnp.float32) + cb1[...]
    c = jnp.maximum(c, 0.0)
    c = jnp.dot(c.astype(jnp.bfloat16), cw2[...],
                preferred_element_type=jnp.float32) + cb2[...]
    c = jnp.maximum(c, 0.0)
    profit_ref[...] = (jnp.sum(c * cw3r[...], axis=-1, keepdims=True)
                       + cb3[...])                                    # (B, 1)


# ---------------------------------------------------------------------------
# Kernel 2: prompt_actor MLP + actor head over a (batch, seq-tile) grid.
# ---------------------------------------------------------------------------
def mab_kernel(hs_ref, gh_ref, pw1, pb1, pw2, pb2, pw3, pb3, hb_s, mab_ref):
    t = pl.program_id(1)

    x = hs_ref[0]                                                     # (ts, Hb) bf16
    h = jnp.dot(x, pw1[...], preferred_element_type=jnp.float32) + pb1[...]
    h = jnp.maximum(h, 0.0)
    h = jnp.dot(h.astype(jnp.bfloat16), pw2[...],
                preferred_element_type=jnp.float32) + pb2[...]
    h = jnp.maximum(h, 0.0)
    p3 = jnp.dot(h.astype(jnp.bfloat16), pw3[...],
                 preferred_element_type=jnp.float32) + pb3[...]       # (ts, H) f32

    # Actor head: hw already folded into gh.  Contract over H producing a
    # lane-dense (1, ts) row (QK^T-style matmul -> unmasked lane stores).
    g = gh_ref[0].astype(jnp.bfloat16)                                # (1, H)
    row = lax.dot_general(g, p3.astype(jnp.bfloat16),
                          dimension_numbers=(((1,), (1,)), ((), ())),
                          preferred_element_type=jnp.float32)         # (1, ts)
    mab_ref[0, pl.ds(t, 1), :] = row + hb_s[0, 0]


def mab_forward(hidden_states, params, *, max_seq_tile=512):
    """Runs the MABModel head on precomputed base-model hidden states."""
    B, S, Hb = hidden_states.shape
    H = params["pw1"].shape[1]

    bf = lambda a: a.astype(jnp.bfloat16)
    f32 = lambda a: a.astype(jnp.float32)

    # ---- sequence tiling ---------------------------------------------------
    s8 = _round_up(S, 8)
    if s8 <= max_seq_tile:
        ts = s8                                   # one tile covers the sequence
    else:
        ts = _round_up(_cdiv(s8, _cdiv(s8, max_seq_tile)), 128)
    T = _cdiv(s8, ts)
    s_pad = T * ts

    hs_bf = bf(hidden_states)
    last_h = hs_bf[:, S - 1, :]                                       # (B, Hb)
    hs_pad = hs_bf if s_pad == S else jnp.pad(
        hs_bf, ((0, 0), (0, s_pad - S), (0, 0)))

    # Weights as [in, out] bf16 for the MXU; biases f32.
    pw1, pw2, pw3 = bf(params["pw1"]), bf(params["pw2"]), bf(params["pw3"])
    pb1, pb2, pb3 = f32(params["pb1"]), f32(params["pb2"]), f32(params["pb3"])
    gw1, gw2, gw3 = bf(params["gw1"]), bf(params["gw2"]), bf(params["gw3"])
    gb1, gb2, gb3 = f32(params["gb1"]), f32(params["gb2"]), f32(params["gb3"])
    cw1, cw2 = bf(params["cw1"]), bf(params["cw2"])
    cb1, cb2 = f32(params["cb1"]), f32(params["cb2"])
    cw3r = f32(params["cw3"]).reshape(1, H)                           # (1, H)
    cb3 = f32(params["cb3"])                                          # (1, 1)
    hw = f32(params["hw"])                                            # (1, H)
    hb = f32(params["hb"])                                            # (1, 1) -> SMEM

    # ---- batched last-token heads (single Pallas invocation, no grid) -------
    gh, profit = pl.pallas_call(
        head_kernel,
        out_shape=(jax.ShapeDtypeStruct((B, H), jnp.float32),
                   jax.ShapeDtypeStruct((B, 1), jnp.float32)),
    )(last_h, gw1, gb1, gw2, gb2, gw3, gb3,
      cw1, cb1, cw2, cb2, cw3r, cb3, hw)
    gh3 = gh[:, None, :]                                              # (B, 1, H)

    # ---- main (batch, seq-tile) grid ----------------------------------------
    phys_vmem = 128 * 2 ** 20
    try:
        phys_vmem = getattr(pltpu.get_tpu_info(), "vmem_capacity_bytes",
                            phys_vmem)
    except Exception:
        pass

    def run(single_buffer_weights):
        def resident(a):
            nd = a.ndim
            idx = lambda b, t, _n=nd: (0,) * _n
            if single_buffer_weights:
                return pl.BlockSpec(a.shape, idx,
                                    pipeline_mode=pl.Buffered(1))
            return pl.BlockSpec(a.shape, idx)

        wbuf = 1 if single_buffer_weights else 2
        wbytes = (2 * (pw1.size + pw2.size + pw3.size)
                  + 4 * (pb1.size + pb2.size + pb3.size))
        est = (wbuf * wbytes
               + 2 * ts * Hb * 2             # double-buffered hidden-state tiles
               + 2 * H * 4                   # gh blocks
               + 2 * T * ts * 4              # output block buffers
               + 6 * ts * max(H, Hb) * 4)    # intermediate activations headroom
        vmem_limit = int(min(phys_vmem * 3 // 4,
                             max(2 * est, 16 * 2 ** 20)))

        in_specs = [
            pl.BlockSpec((1, ts, Hb), lambda b, t: (b, t, 0)),   # hidden tile
            pl.BlockSpec((1, 1, H), lambda b, t: (b, 0, 0)),     # gh (per batch)
            resident(pw1), resident(pb1), resident(pw2), resident(pb2),
            resident(pw3), resident(pb3),
            pl.BlockSpec(memory_space=pltpu.MemorySpace.SMEM),   # hb scalar
        ]
        # Output block is resident across the seq-tile axis (lane-dense rows
        # written per step), so that axis must stay "arbitrary"; batch is
        # "parallel" for megacore sharding.
        return pl.pallas_call(
            mab_kernel,
            grid=(B, T),
            in_specs=in_specs,
            out_specs=pl.BlockSpec((1, T, ts), lambda b, t: (b, 0, 0)),
            out_shape=jax.ShapeDtypeStruct((B, T, ts), jnp.float32),
            compiler_params=pltpu.CompilerParams(
                dimension_semantics=("parallel", "arbitrary"),
                vmem_limit_bytes=vmem_limit),
        )(hs_pad, gh3, pw1, pb1, pw2, pb2, pw3, pb3, hb)

    try:
        mab_pad = run(True)
    except Exception:
        # Fallback if this jax build rejects single-buffered resident blocks.
        mab_pad = run(False)

    mab_values = mab_pad.reshape(B, s_pad)[:, :S - 1]   # drop generated + pad
    profit_value = profit[:, 0]
    return mab_values, profit_value


def make_params(key, hb_base, h):
    """Deterministic parameter init.  Linear weights stored as [in, out]."""
    keys = jax.random.split(key, 20)
    s = 0.1
    p = {}
    p["pw1"] = s * jax.random.normal(keys[0], (hb_base, h), jnp.float32)
    p["pb1"] = s * jax.random.normal(keys[1], (1, h), jnp.float32)
    p["pw2"] = s * jax.random.normal(keys[2], (h, h), jnp.float32)
    p["pb2"] = s * jax.random.normal(keys[3], (1, h), jnp.float32)
    p["pw3"] = s * jax.random.normal(keys[4], (h, h), jnp.float32)
    p["pb3"] = s * jax.random.normal(keys[5], (1, h), jnp.float32)
    p["gw1"] = s * jax.random.normal(keys[6], (hb_base, h), jnp.float32)
    p["gb1"] = s * jax.random.normal(keys[7], (1, h), jnp.float32)
    p["gw2"] = s * jax.random.normal(keys[8], (h, h), jnp.float32)
    p["gb2"] = s * jax.random.normal(keys[9], (1, h), jnp.float32)
    p["gw3"] = s * jax.random.normal(keys[10], (h, h), jnp.float32)
    p["gb3"] = s * jax.random.normal(keys[11], (1, h), jnp.float32)
    p["cw1"] = s * jax.random.normal(keys[12], (hb_base, h), jnp.float32)
    p["cb1"] = s * jax.random.normal(keys[13], (1, h), jnp.float32)
    p["cw2"] = s * jax.random.normal(keys[14], (h, h), jnp.float32)
    p["cb2"] = s * jax.random.normal(keys[15], (1, h), jnp.float32)
    p["cw3"] = s * jax.random.normal(keys[16], (h, 1), jnp.float32)
    p["cb3"] = s * jax.random.normal(keys[17], (1, 1), jnp.float32)
    p["hw"] = s * jax.random.normal(keys[18], (1, h), jnp.float32)
    p["hb"] = s * jax.random.normal(keys[19], (1, 1), jnp.float32)
    return p


def reference_forward(hs, p):
    """Pure-JAX f32 reference (mirrors the PyTorch forward semantics)."""
    def mlp3(x, w1, b1, w2, b2, w3, b3):
        h = jnp.maximum(x @ w1 + b1, 0.0)
        h = jnp.maximum(h @ w2 + b2, 0.0)
        return h @ w3 + b3

    prompt_h = hs[:, :-1, :]
    gen_h = hs[:, -1, :][:, None, :]
    prompt_a = mlp3(prompt_h, p["pw1"], p["pb1"], p["pw2"], p["pb2"],
                    p["pw3"], p["pb3"])
    gen_a = mlp3(gen_h, p["gw1"], p["gb1"], p["gw2"], p["gb2"],
                 p["gw3"], p["gb3"])
    corr = gen_a * prompt_a
    mab = jnp.sum(corr * p["hw"][0], axis=-1) + p["hb"][0, 0]
    profit = mlp3(hs[:, -1, :], p["cw1"], p["cb1"], p["cw2"], p["cb2"],
                  p["cw3"], p["cb3"])[:, 0]
    return mab, profit


if __name__ == "__main__":
    B, S = 2, 8          # batch, sequence (left-padded; last token = generated)
    HB_BASE = 32         # base_model.hidden_size
    H = 32               # MABModel hidden_size
    VOCAB = 64

    key = jax.random.PRNGKey(0)
    k_ids, k_emb, k_params = jax.random.split(key, 3)

    input_ids = jax.random.randint(k_ids, (B, S), 0, VOCAB, dtype=jnp.int32)
    attention_mask = jnp.concatenate(
        [jnp.zeros((B, 2), jnp.int32), jnp.ones((B, S - 2), jnp.int32)], axis=1)

    # TODO(synk): deterministic stand-in for base_model.get_hidden_states.
    emb_table = 0.5 * jax.random.normal(k_emb, (VOCAB, HB_BASE), jnp.float32)
    hidden_states = emb_table[input_ids] * attention_mask[..., None].astype(jnp.float32)

    params = make_params(k_params, HB_BASE, H)

    mab_values, profit_value = mab_forward(hidden_states, params)
    jax.block_until_ready((mab_values, profit_value))

    mab_ref, profit_ref = reference_forward(hidden_states, params)
    assert mab_values.shape == (B, S - 1)
    assert profit_value.shape == (B,)
    # bf16 MXU operands -> relaxed tolerance vs the f32 reference.
    assert jnp.allclose(mab_values, mab_ref, atol=2e-2, rtol=2e-2)
    assert jnp.allclose(profit_value, profit_ref, atol=2e-2, rtol=2e-2)

    print("KERNEL_OK")
</pallas_src>

<mosaic_0001>
module attributes {stable_mosaic.version = 11 : i64} {
  func.func @head_kernel(%arg0: memref<2x32xbf16, #tpu.memory_space<vmem>>, %arg1: memref<32x32xbf16, #tpu.memory_space<vmem>>, %arg2: memref<1x32xf32, #tpu.memory_space<vmem>>, %arg3: memref<32x32xbf16, #tpu.memory_space<vmem>>, %arg4: memref<1x32xf32, #tpu.memory_space<vmem>>, %arg5: memref<32x32xbf16, #tpu.memory_space<vmem>>, %arg6: memref<1x32xf32, #tpu.memory_space<vmem>>, %arg7: memref<32x32xbf16, #tpu.memory_space<vmem>>, %arg8: memref<1x32xf32, #tpu.memory_space<vmem>>, %arg9: memref<32x32xbf16, #tpu.memory_space<vmem>>, %arg10: memref<1x32xf32, #tpu.memory_space<vmem>>, %arg11: memref<1x32xf32, #tpu.memory_space<vmem>>, %arg12: memref<1x1xf32, #tpu.memory_space<vmem>>, %arg13: memref<1x32xf32, #tpu.memory_space<vmem>>, %arg14: memref<2x32xf32, #tpu.memory_space<vmem>>, %arg15: memref<2x1xf32, #tpu.memory_space<vmem>>) attributes {dimension_semantics = [], scalar_prefetch = 0 : i64, scratch_operands = 0 : i64, tpu.core_type = #tpu.core_type<tc>} {
    %c0 = arith.constant 0 : index
    %c0_0 = arith.constant 0 : index
    %0 = vector.load %arg0[%c0, %c0_0] : memref<2x32xbf16, #tpu.memory_space<vmem>>, vector<2x32xbf16>
    %c0_1 = arith.constant 0 : index
    %c0_2 = arith.constant 0 : index
    %1 = vector.load %arg1[%c0_1, %c0_2] : memref<32x32xbf16, #tpu.memory_space<vmem>>, vector<32x32xbf16>
    %cst = arith.constant dense<0.000000e+00> : vector<2x32xf32>
    %2 = tpu.matmul %0, %1, %cst {dimension_numbers = #tpu.dot_dimension_numbers<[1], [0], [0], [1], [0, 0, 1, 1], [], []>} : vector<2x32xbf16>, vector<32x32xbf16>, vector<2x32xf32> -> vector<2x32xf32>
    %c0_3 = arith.constant 0 : index
    %c0_4 = arith.constant 0 : index
    %3 = vector.load %arg2[%c0_3, %c0_4] : memref<1x32xf32, #tpu.memory_space<vmem>>, vector<1x32xf32>
    %4 = vector.broadcast %3 : vector<1x32xf32> to vector<2x32xf32>
    %5 = arith.addf %2, %4 : vector<2x32xf32>
    %cst_5 = arith.constant 0.000000e+00 : f32
    %6 = vector.broadcast %cst_5 : f32 to vector<2x32xf32>
    %7 = arith.maximumf %5, %6 : vector<2x32xf32>
    %8 = arith.truncf %7 : vector<2x32xf32> to vector<2x32xbf16>
    %c0_6 = arith.constant 0 : index
    %c0_7 = arith.constant 0 : index
    %9 = vector.load %arg3[%c0_6, %c0_7] : memref<32x32xbf16, #tpu.memory_space<vmem>>, vector<32x32xbf16>
    %cst_8 = arith.constant dense<0.000000e+00> : vector<2x32xf32>
    %10 = tpu.matmul %8, %9, %cst_8 {dimension_numbers = #tpu.dot_dimension_numbers<[1], [0], [0], [1], [0, 0, 1, 1], [], []>} : vector<2x32xbf16>, vector<32x32xbf16>, vector<2x32xf32> -> vector<2x32xf32>
    %c0_9 = arith.constant 0 : index
    %c0_10 = arith.constant 0 : index
    %11 = vector.load %arg4[%c0_9, %c0_10] : memref<1x32xf32, #tpu.memory_space<vmem>>, vector<1x32xf32>
    %12 = vector.broadcast %11 : vector<1x32xf32> to vector<2x32xf32>
    %13 = arith.addf %10, %12 : vector<2x32xf32>
    %cst_11 = arith.constant 0.000000e+00 : f32
    %14 = vector.broadcast %cst_11 : f32 to vector<2x32xf32>
    %15 = arith.maximumf %13, %14 : vector<2x32xf32>
    %16 = arith.truncf %15 : vector<2x32xf32> to vector<2x32xbf16>
    %c0_12 = arith.constant 0 : index
    %c0_13 = arith.constant 0 : index
    %17 = vector.load %arg5[%c0_12, %c0_13] : memref<32x32xbf16, #tpu.memory_space<vmem>>, vector<32x32xbf16>
    %cst_14 = arith.constant dense<0.000000e+00> : vector<2x32xf32>
    %18 = tpu.matmul %16, %17, %cst_14 {dimension_numbers = #tpu.dot_dimension_numbers<[1], [0], [0], [1], [0, 0, 1, 1], [], []>} : vector<2x32xbf16>, vector<32x32xbf16>, vector<2x32xf32> -> vector<2x32xf32>
    %c0_15 = arith.constant 0 : index
    %c0_16 = arith.constant 0 : index
    %19 = vector.load %arg6[%c0_15, %c0_16] : memref<1x32xf32, #tpu.memory_space<vmem>>, vector<1x32xf32>
    %20 = vector.broadcast %19 : vector<1x32xf32> to vector<2x32xf32>
    %21 = arith.addf %18, %20 : vector<2x32xf32>
    %c0_17 = arith.constant 0 : index
    %c0_18 = arith.constant 0 : index
    %22 = vector.load %arg13[%c0_17, %c0_18] : memref<1x32xf32, #tpu.memory_space<vmem>>, vector<1x32xf32>
    %23 = vector.broadcast %22 : vector<1x32xf32> to vector<2x32xf32>
    %24 = arith.mulf %21, %23 : vector<2x32xf32>
    %c0_19 = arith.constant 0 : index
    %c0_20 = arith.constant 0 : index
    %25 = vector.load %arg14[%c0_19, %c0_20] : memref<2x32xf32, #tpu.memory_space<vmem>>, vector<2x32xf32>
    tpu.vector_store %arg14[%c0_19, %c0_20], %24 {strides = array<i32>} : memref<2x32xf32, #tpu.memory_space<vmem>>, vector<2x32xf32>,
    %c0_21 = arith.constant 0 : index
    %c0_22 = arith.constant 0 : index
    %26 = vector.load %arg7[%c0_21, %c0_22] : memref<32x32xbf16, #tpu.memory_space<vmem>>, vector<32x32xbf16>
    %cst_23 = arith.constant dense<0.000000e+00> : vector<2x32xf32>
    %27 = tpu.matmul %0, %26, %cst_23 {dimension_numbers = #tpu.dot_dimension_numbers<[1], [0], [0], [1], [0, 0, 1, 1], [], []>} : vector<2x32xbf16>, vector<32x32xbf16>, vector<2x32xf32> -> vector<2x32xf32>
    %c0_24 = arith.constant 0 : index
    %c0_25 = arith.constant 0 : index
    %28 = vector.load %arg8[%c0_24, %c0_25] : memref<1x32xf32, #tpu.memory_space<vmem>>, vector<1x32xf32>
    %29 = vector.broadcast %28 : vector<1x32xf32> to vector<2x32xf32>
    %30 = arith.addf %27, %29 : vector<2x32xf32>
    %cst_26 = arith.constant 0.000000e+00 : f32
    %31 = vector.broadcast %cst_26 : f32 to vector<2x32xf32>
    %32 = arith.maximumf %30, %31 : vector<2x32xf32>
    %33 = arith.truncf %32 : vector<2x32xf32> to vector<2x32xbf16>
    %c0_27 = arith.constant 0 : index
    %c0_28 = arith.constant 0 : index
    %34 = vector.load %arg9[%c0_27, %c0_28] : memref<32x32xbf16, #tpu.memory_space<vmem>>, vector<32x32xbf16>
    %cst_29 = arith.constant dense<0.000000e+00> : vector<2x32xf32>
    %35 = tpu.matmul %33, %34, %cst_29 {dimension_numbers = #tpu.dot_dimension_numbers<[1], [0], [0], [1], [0, 0, 1, 1], [], []>} : vector<2x32xbf16>, vector<32x32xbf16>, vector<2x32xf32> -> vector<2x32xf32>
    %c0_30 = arith.constant 0 : index
    %c0_31 = arith.constant 0 : index
    %36 = vector.load %arg10[%c0_30, %c0_31] : memref<1x32xf32, #tpu.memory_space<vmem>>, vector<1x32xf32>
    %37 = vector.broadcast %36 : vector<1x32xf32> to vector<2x32xf32>
    %38 = arith.addf %35, %37 : vector<2x32xf32>
    %cst_32 = arith.constant 0.000000e+00 : f32
    %39 = vector.broadcast %cst_32 : f32 to vector<2x32xf32>
    %40 = arith.maximumf %38, %39 : vector<2x32xf32>
    %c0_33 = arith.constant 0 : index
    %c0_34 = arith.constant 0 : index
    %41 = vector.load %arg11[%c0_33, %c0_34] : memref<1x32xf32, #tpu.memory_space<vmem>>, vector<1x32xf32>
    %42 = vector.broadcast %41 : vector<1x32xf32> to vector<2x32xf32>
    %43 = arith.mulf %40, %42 : vector<2x32xf32>
    %cst_35 = arith.constant dense<0.000000e+00> : vector<2xf32>
    %44 = vector.multi_reduction <add>, %43, %cst_35 [1] : vector<2x32xf32> to vector<2xf32>
    %45 = vector.shape_cast %44 : vector<2xf32> to vector<2x1xf32>
    %c0_36 = arith.constant 0 : index
    %c0_37 = arith.constant 0 : index
    %46 = vector.load %arg12[%c0_36, %c0_37] : memref<1x1xf32, #tpu.memory_space<vmem>>, vector<1x1xf32>
    %47 = vector.broadcast %46 : vector<1x1xf32> to vector<2x1xf32>
    %48 = arith.addf %45, %47 : vector<2x1xf32>
    %c0_38 = arith.constant 0 : index
    %c0_39 = arith.constant 0 : index
    %49 = vector.load %arg15[%c0_38, %c0_39] : memref<2x1xf32, #tpu.memory_space<vmem>>, vector<2x1xf32>
    tpu.vector_store %arg15[%c0_38, %c0_39], %48 {strides = array<i32>} : memref<2x1xf32, #tpu.memory_space<vmem>>, vector<2x1xf32>,
    return
  }
}

</mosaic_0001>

<bundles_post_ra>
// kernel: tpu_custom_call.1
= control target key start
LH: loop header
LB: loop body
LE: loop exit
PB: predicated region body
PF: predicated region fallthrough
CT: control target
= control target key end

     0   :  { %s966_s0 = inlined_call_operand.vmem [shape: bf16[2,32], index: 0, kind: input, shape index: {}]   ;;  %s967_s1 = inlined_call_operand.hbm [shape: bf16[32,32], index: 1, kind: input, shape index: {}]   ;;  %s968_s2 = inlined_call_operand.vmem [shape: f32[1,32], index: 2, kind: input, shape index: {}]   ;;  %s969_s3 = inlined_call_operand.hbm [shape: bf16[32,32], index: 3, kind: input, shape index: {}]   ;;  %s970_s4 = inlined_call_operand.hbm [shape: f32[1,32], index: 4, kind: input, shape index: {}]   ;;  %s971_s5 = inlined_call_operand.hbm [shape: bf16[32,32], index: 5, kind: input, shape index: {}]   ;;  %s972_s6 = inlined_call_operand.hbm [shape: f32[1,32], index: 6, kind: input, shape index: {}]   ;;  %s973_s7 = inlined_call_operand.hbm [shape: bf16[32,32], index: 7, kind: input, shape index: {}]   ;;  %s974_s8 = inlined_call_operand.hbm [shape: f32[1,32], index: 8, kind: input, shape index: {}]   ;;  %s975_s9 = inlined_call_operand.vmem [shape: bf16[32,32], index: 9, kind: input, shape index: {}]   ;;  %s976_s10 = inlined_call_operand.vmem [shape: f32[1,32], index: 10, kind: input, shape index: {}]   ;;  %s977_s11 = inlined_call_operand.vmem [shape: f32[1,32], index: 11, kind: input, shape index: {}]   ;;  %s978_s12 = inlined_call_operand.<no memory space> [shape: f32[1,1], index: 12, kind: input, shape index: {}]   ;;  %s979_s13 = inlined_call_operand.vmem [shape: f32[1,32], index: 13, kind: input, shape index: {}]   ;;  %s980_s14 = inlined_call_operand.hbm [shape: f32[2,32], index: 14, kind: output, shape index: {0}]   ;;  %s981_s15 = inlined_call_operand.vmem [shape: f32[2,1], index: 15, kind: output, shape index: {1}]  }
   0x1   :  { %v21_v0 = vstv %s978_s12 }
   0x2   :  { %22 = vst [vmem:[#allocation2] sm:$0x1] %v21_v0 }
   0x3   :  { %23 = vsyncpa [#allocation4], 0 }
   0x4   :  { %24 = vsyncpa [#allocation7], 0 }
   0x5   :  { %25 = vsyncpa [#allocation10], 0 }
   0x6   :  { %26 = vsyncpa [#allocation13], 0 }
   0x7   :  { %27 = vsyncpa [#allocation5], 0  ;;  %s801_s20 = smov [#allocation6]   ;;  %s802_s22 = smov [#allocation9]  }
   0x8   :  { %s49_s21 = sshll.u32 %s801_s20, 4  ;;  %s71_s23 = sshll.u32 %s802_s22, 4  ;;  %s50_s21 = int_to_ptr.vmem [resolvable:$true] %s49_s21  ;;  %s72_s23 = int_to_ptr.vmem [resolvable:$true] %s71_s23 }
   0x9   :  { %s639_s24 = scalar_lea.vmem %s50_s21, 256  ;;  %p644_p1 = scmp.lt.s32.totalorder %s50_s21, %s50_s21 }
   0xa   :  { %p640_p0 = scmp.ne.s32.totalorder %s50_s21, %s639_s24  ;;  %p645_p2 = scmp.lt.s32.totalorder %s639_s24, %s639_s24 }
   0xc   :  { %p646_p3 = por %p645_p2, %p644_p1 }
   0xe   :  { %p647_p4 = pnand %p646_p3, %p640_p0 }
  0x10   :  { %650 = shalt.err (!%p647_p4)
}
  0x11   :  { %s803_s12 = smov 64   ;;  %s804_s25 = smov 4  }
  0x12   :  { %55 = dma.hbm_to_vmem [thread:$0]  %s969_s3, 256, %s50_s21, [#allocation7], %s803_s12, %s803_s12, %s804_s25  }
  0x13   :  { %s659_s28 = scalar_lea.vmem %s72_s23, 256  ;;  %p664_p6 = scmp.lt.s32.totalorder %s72_s23, %s72_s23 }
  0x14   :  { %p660_p5 = scmp.ne.s32.totalorder %s72_s23, %s659_s28  ;;  %p665_p7 = scmp.lt.s32.totalorder %s659_s28, %s659_s28 }
  0x16   :  { %p666_p8 = por %p665_p7, %p664_p6 }
  0x18   :  { %p667_p9 = pnand %p666_p8, %p660_p5 }
  0x1a   :  { %670 = shalt.err (!%p667_p9)
}
  0x1b   :  { %77 = dma.hbm_to_vmem [thread:$0]  %s971_s5, 256, %s72_s23, [#allocation10], %s803_s12, %s803_s12, %s804_s25  }
  0x1c   :  { %s805_s16 = smov [#allocation12]   ;;  %s806_s18 = smov [#allocation3]  }
  0x1d   :  { %s93_s17 = sshll.u32 %s805_s16, 4  ;;  %s35_s19 = sshll.u32 %s806_s18, 4  ;;  %s94_s17 = int_to_ptr.vmem [resolvable:$true] %s93_s17  ;;  %s36_s19 = int_to_ptr.vmem [resolvable:$true] %s35_s19 }
  0x1e   :  { %s679_s3 = scalar_lea.vmem %s94_s17, 256  ;;  %p684_p11 = scmp.lt.s32.totalorder %s94_s17, %s94_s17 }
  0x1f   :  { %p680_p10 = scmp.ne.s32.totalorder %s94_s17, %s679_s3  ;;  %p685_p12 = scmp.lt.s32.totalorder %s679_s3, %s679_s3 }
  0x21   :  { %p686_p13 = por %p685_p12, %p684_p11 }
  0x23   :  { %p687_p0 = pnand %p686_p13, %p680_p10 }
  0x25   :  { %690 = shalt.err (!%p687_p0)
}
  0x26   :  { %99 = dma.hbm_to_vmem [thread:$0]  %s973_s7, 256, %s94_s17, [#allocation13], %s803_s12, %s803_s12, %s804_s25  }
  0x27   :  { %s699_s5 = scalar_lea.vmem %s36_s19, 256  ;;  %p704_p2 = scmp.lt.s32.totalorder %s36_s19, %s36_s19 }
  0x28   :  { %p700_p1 = scmp.ne.s32.totalorder %s36_s19, %s699_s5  ;;  %p705_p3 = scmp.lt.s32.totalorder %s699_s5, %s699_s5 }
  0x2a   :  { %p706_p4 = por %p705_p3, %p704_p2 }
  0x2c   :  { %p707_p5 = pnand %p706_p4, %p700_p1 }
  0x2e   :  { %710 = shalt.err (!%p707_p5)
}
  0x2f   :  { %41 = dma.hbm_to_vmem [thread:$0]  %s967_s1, 256, %s36_s19, [#allocation4], %s803_s12, %s803_s12, %s804_s25  }
  0x30   :  { %s807_s24 = smov [#allocation8]   ;;  %s808_s27 = smov [#allocation11]  }
  0x31   :  { %s62_s26 = sshll.u32 %s807_s24, 4  ;;  %s84_s28 = sshll.u32 %s808_s27, 4  ;;  %s63_s26 = int_to_ptr.vmem [resolvable:$true] %s62_s26  ;;  %s85_s28 = int_to_ptr.vmem [resolvable:$true] %s84_s28 }
  0x32   :  { %s719_s7 = scalar_lea.vmem %s63_s26, 16  ;;  %s723_s29 = scalar_lea.vmem %s63_s26, 32 }
  0x33   :  { %p720_p6 = scmp.ne.s32.totalorder %s63_s26, %s719_s7  ;;  %p724_p7 = scmp.lt.s32.totalorder %s63_s26, %s63_s26 }
  0x34   :  { %p725_p8 = scmp.lt.s32.totalorder %s723_s29, %s719_s7 }
  0x36   :  { %p726_p9 = por %p725_p8, %p724_p7 }
  0x38   :  { %p727_p10 = pnand %p726_p9, %p720_p6 }
  0x3a   :  { %730 = shalt.err (!%p727_p10)
}
  0x3b   :  { %65 = dma.hbm_to_vmem [thread:$0]  %s970_s4, 16, %s63_s26, [#allocation7]  }
  0x3c   :  { %s739_s17 = scalar_lea.vmem %s85_s28, 16  ;;  %s743_s1 = scalar_lea.vmem %s85_s28, 32 }
  0x3d   :  { %p740_p11 = scmp.ne.s32.totalorder %s85_s28, %s739_s17  ;;  %p744_p12 = scmp.lt.s32.totalorder %s85_s28, %s85_s28 }
  0x3e   :  { %p745_p13 = scmp.lt.s32.totalorder %s743_s1, %s739_s17 }
  0x40   :  { %p746_p0 = por %p745_p13, %p744_p12 }
  0x42   :  { %p747_p1 = pnand %p746_p0, %p740_p11 }
  0x44   :  { %750 = shalt.err (!%p747_p1)
}
  0x45   :  { %87 = dma.hbm_to_vmem [thread:$0]  %s972_s6, 16, %s85_s28, [#allocation10]  }
  0x46   :  { %s809_s18 = smov [#allocation14]  }
  0x47   :  { %s106_s19 = sshll.u32 %s809_s18, 4  ;;  %s107_s19 = int_to_ptr.vmem [resolvable:$true] %s106_s19 }
  0x48   :  { %s759_s3 = scalar_lea.vmem %s107_s19, 16  ;;  %s763_s20 = scalar_lea.vmem %s107_s19, 32 }
  0x49   :  { %p760_p2 = scmp.ne.s32.totalorder %s107_s19, %s759_s3  ;;  %p764_p3 = scmp.lt.s32.totalorder %s107_s19, %s107_s19 }
  0x4a   :  { %p765_p4 = scmp.lt.s32.totalorder %s763_s20, %s759_s3 }
  0x4c   :  { %p766_p5 = por %p765_p4, %p764_p3 }
  0x4e   :  { %p767_p6 = pnand %p766_p5, %p760_p2 }
  0x50   :  { %770 = shalt.err (!%p767_p6)
}
  0x51   :  { %109 = dma.hbm_to_vmem [thread:$0]  %s974_s8, 16, %s107_s19, [#allocation13]  }
  0x52   :  { %791 = dma.done.wait [#allocation4], 256  }
  0x53   :  { %792 = vsyncadd [#allocation4], 4294967040 }
  0x54   :  { %793 = dma.done.wait [#allocation7], 272  }
  0x55   :  { %794 = vsyncadd [#allocation7], 4294967024 }
  0x56   :  { %795 = dma.done.wait [#allocation10], 272  }
  0x57   :  { %796 = vsyncadd [#allocation10], 4294967024 }
  0x58   :  { %797 = dma.done.wait [#allocation13], 272  }
  0x59   :  { %798 = vsyncadd [#allocation13], 4294967024  ;;  %v810_v1 = vmov 0.0   ;;  %vm811_vm0 = vmmov 0   ;;  %v621_v2 = vld [vmem:[#allocation3 + $0x8] sm:$0xff]   ;;  %v622_v3 = vld [vmem:[#allocation3] sm:$0xff]  }
  0x5a   :  { %569 = vmatprep.subr.bf16.mxu0 %v810_v1  ;;  %573 = vmatprep.mubr.msk.bf16.mxu0 %vm811_vm0, %v810_v1  ;;  %vm166_vm1 = vcmask 261120   ;;  %v623_v4 = vld [vmem:[#allocation6 + $0x8] sm:$0xff]   ;;  %v624_v6 = vld [vmem:[#allocation6] sm:$0xff]   ;;  %v628_v18 = vld [vmem:[#allocation9] sm:$0xff]   ;;  %vm354_vm2 = vcmask 254976  }
  0x5b   :  { %577 = vmatprep.subr.bf16.mxu1 %v810_v1  ;;  %581 = vmatprep.mubr.msk.bf16.mxu1 %vm811_vm0, %v810_v1  ;;  %v142_v5 = vld [vmem:[%s966_s0] sm:$0x1]  ;;  %v627_v7 = vld [vmem:[#allocation9 + $0x8] sm:$0xff]   ;;  %v626_v17 = vld [vmem:[#allocation12] sm:$0xff]  }
  0x5c   :  { %570 = vmatpush3.bf16.msra.mxu0 %v621_v2  ;;  %578 = vmatpush3.bf16.msra.mxu1 %v623_v4  ;;  %v531_v8 = vld [vmem:[%s968_s2] ss:$0 sm:$0xff]  ;;  %v535_v19 = vld [vmem:[#allocation8] ss:$0 sm:$0xff]  ;;  %v629_v25 = vld [vmem:[%s975_s9 + $0x8] sm:$0xff]  }
  0x5d   :  { %571 = vmatprep.subr.bf16.mxu0 %v810_v1  ;;  %579 = vmatprep.subr.bf16.mxu1 %v810_v1  ;;  %v625_v14 = vld [vmem:[#allocation12 + $0x8] sm:$0xff]   ;;  %v544_v28 = vld [vmem:[#allocation14] ss:$0 sm:$0xff]  ;;  %v539_v37 = vld [vmem:[#allocation11] ss:$0 sm:$0xff] }
  0x5e   :  { %v630_v30 = vld [vmem:[%s975_s9] sm:$0xff]  }
  0x5f   :  { %v543_v39 = vld [vmem:[%s979_s13] ss:$0 sm:$0xff]  ;;  %s812_s13 = smov [#allocation15]  }
  0x60   :  { %572 = vmatpush3.bf16.msra.mxu0 %v622_v3  ;;  %580 = vmatpush3.bf16.msra.mxu1 %v624_v6  ;;  %v548_v45 = vld [vmem:[%s976_s10] ss:$0 sm:$0xff]  ;;  %s515_s30 = sshll.u32 %s812_s13, 4  ;;  %s516_s30 = int_to_ptr.vmem [resolvable:$true] %s515_s30 }
  0x61   :  { %585 = vmatprep.subr.bf16.mxu0 %v810_v1  ;;  %593 = vmatprep.subr.bf16.mxu1 %v810_v1  ;;  %v552_v49 = vld [vmem:[%s977_s11] ss:$0 sm:$0xff]  ;;  %s771_s16 = scalar_lea.vmem %s516_s30, 32  ;;  %p776_p8 = scmp.lt.s32.totalorder %s516_s30, %s516_s30 }
  0x62   :  { %p772_p7 = scmp.ne.s32.totalorder %s516_s30, %s771_s16  ;;  %p777_p9 = scmp.lt.s32.totalorder %s771_s16, %s771_s16 }
  0x63   :  { %574 = vmatmul.mubr.msk.bf16.vlgmr.msra.gmra.mxu0 %vm166_vm1, %v142_v5 }
  0x64   :  { %589 = vmatprep.mubr.msk.bf16.mxu0 %vm811_vm0, %v810_v1  ;;  %586 = vmatpush3.bf16.msra.mxu0 %v627_v7  ;;  %p778_p10 = por %p777_p9, %p776_p8 }
  0x65   :  { %587 = vmatprep.subr.bf16.mxu0 %v810_v1 }
  0x66   :  { %p779_p11 = pnand %p778_p10, %p772_p7 }
  0x68   :  { %588 = vmatpush3.bf16.msra.mxu0 %v628_v18 }
  0x69   :  { %601 = vmatprep.subr.bf16.mxu0 %v810_v1 }
 0x123   :  { %v204_v9 = vpop.f32.mrf.mxu0 }
 0x124   :  { %v205_v10 = vadd.f32 %v531_v8, %v204_v9 }
 0x125   :  { %v575_v11 = vpop.f32.mrf.mxu0 }
 0x126   :  { %v210_v12 = vmax.f32 %v205_v10, 0.0 }
 0x127   :  { %v207_v13 = vpop.f32.mrf.mxu0 }
 0x128   :  { %v211_v15 = vpack.c.bf16 %v210_v12, %v210_v12 }
 0x129   :  { %v576_v16 = vpop.f32.mrf.mxu0 }
 0x12a   :  { %582 = vmatmul.mubr.msk.bf16.vlgmr.msra.gmra.mxu1 %vm166_vm1, %v211_v15 }
 0x12b   :  { %594 = vmatpush3.bf16.msra.mxu1 %v625_v14  ;;  %597 = vmatprep.mubr.msk.bf16.mxu1 %vm811_vm0, %v810_v1 }
 0x12c   :  { %595 = vmatprep.subr.bf16.mxu1 %v810_v1 }
 0x12f   :  { %596 = vmatpush3.bf16.msra.mxu1 %v626_v17 }
 0x132   :  { %598 = vmatmul.mubr.msk.bf16.vlgmr.msra.gmra.mxu1 %vm166_vm1, %v142_v5 }
 0x1ea   :  { %v272_v20 = vpop.f32.mrf.mxu1 }
 0x1eb   :  { %v273_v21 = vadd.f32 %v535_v19, %v272_v20 }
 0x1ec   :  { %v583_v22 = vpop.f32.mrf.mxu1 }
 0x1ed   :  { %v278_v23 = vmax.f32 %v273_v21, 0.0 }
 0x1ee   :  { %v275_v24 = vpop.f32.mrf.mxu1 }
 0x1ef   :  { %v279_v26 = vpack.c.bf16 %v278_v23, %v278_v23 }
 0x1f0   :  { %v584_v27 = vpop.f32.mrf.mxu1 }
 0x1f1   :  { %590 = vmatmul.mubr.msk.bf16.vlgmr.msra.gmra.mxu0 %vm166_vm1, %v279_v26 }
 0x1f2   :  { %602 = vmatpush3.bf16.msra.mxu0 %v629_v25  ;;  %v413_v29 = vpop.f32.mrf.mxu1  ;;  %605 = vmatprep.mubr.msk.bf16.mxu0 %vm811_vm0, %v810_v1 }
 0x1f3   :  { %v414_v31 = vadd.f32 %v544_v28, %v413_v29  ;;  %603 = vmatprep.subr.bf16.mxu0 %v810_v1 }
 0x1f4   :  { %v599_v32 = vpop.f32.mrf.mxu1 }
 0x1f5   :  { %v419_v33 = vmax.f32 %v414_v31, 0.0 }
 0x1f6   :  { %604 = vmatpush3.bf16.msra.mxu0 %v630_v30  ;;  %v416_v34 = vpop.f32.mrf.mxu1 }
 0x1f7   :  { %v420_v35 = vpack.c.bf16 %v419_v33, %v419_v33 }
 0x1f8   :  { %v600_v36 = vpop.f32.mrf.mxu1 }
 0x1f9   :  { %606 = vmatmul.mubr.msk.bf16.vlgmr.msra.gmra.mxu0 %vm166_vm1, %v420_v35 }
 0x2b1   :  { %v340_v38 = vpop.f32.mrf.mxu0 }
 0x2b2   :  { %v341_v40 = vadd.f32 %v539_v37, %v340_v38 }
 0x2b3   :  { %v591_v41 = vpop.f32.mrf.mxu0 }
 0x2b4   :  { %v353_v42 = vmul.f32 %v543_v39, %v341_v40 }
 0x2b5   :  { %v343_v43 = vpop.f32.mrf.mxu0 }
 0x2b6   :  { %355 = vst.msk [vmem:[#allocation15] sm:$0x3] %vm354_vm2, %v353_v42 }
 0x2b7   :  { %v592_v44 = vpop.f32.mrf.mxu0 }
 0x2b9   :  { %v481_v46 = vpop.f32.mrf.mxu0 }
 0x2ba   :  { %v482_v47 = vadd.f32 %v548_v45, %v481_v46 }
 0x2bb   :  { %v607_v48 = vpop.f32.mrf.mxu0 }
 0x2bc   :  { %v487_v50 = vmax.f32 %v482_v47, 0.0 }
 0x2bd   :  { %v484_v51 = vpop.f32.mrf.mxu0 }
 0x2be   :  { %v495_v52 = vmul.f32 %v552_v49, %v487_v50 }
 0x2bf   :  { %v608_v53 = vpop.f32.mrf.mxu0 }
 0x2c0   :  { %v496_v54 = vsel %vm354_vm2, %v495_v52, 0.0 }
 0x2c1   :  { %497 = vadd.xlane.f32.xlu0 %v496_v54 }
 0x2c2   :  { %782 = shalt.err (!%p779_p11)
}
 0x2c3   :  { %518 = dma.vmem_to_hbm [thread:$0]  %s516_s30, 32, %s980_s14, [#allocation5]   ;;  %v553_v55 = vld [vmem:[#allocation2] ss:$0 sm:$0xff]  ;;  %vm507_vm3 = vcmask 1024  }
 0x34a   :  { %v498_v56 = vpop.xlane.xlu0 %497 }
 0x34b   :  { %v506_v57 = vadd.f32 %v553_v55, %v498_v56 }
 0x34d   :  { %508 = vst.msk [vmem:[%s981_s15] sm:$0x3] %vm507_vm3, %v506_v57 }
 0x34e   :  { %799 = dma.done.wait [#allocation5], 32  }
 0x34f   :  { %800 = vsyncadd [#allocation5], 4294967264 }
 0x350   :  { %526 = vsyncpa [#allocation4], 1 }
 0x351   :  { %527 = vsyncpa [#allocation7], 1 }
 0x352   :  { %528 = vsyncpa [#allocation10], 1 }
 0x353   :  { %529 = vsyncpa [#allocation13], 1 }
 0x354   :  { %530 = vsyncpa [#allocation5], 1 }

</bundles_post_ra>
